<compile_context>
chip_gen: v7x
topology: tpu7x:2x2x1
jax: 0.10.0
libtpu: 0.0.40
codegen_flags: <defaults>
</compile_context>

<pallas_src>
import jax
import jax.numpy as jnp
from jax.experimental import pallas as pl
from jax.experimental.pallas import tpu as pltpu


def adapter_kernel(x_ref, w_ref, b_ref, scale_ref, o_ref):
    """out = x + scale * relu(x @ Wt + b), fused in one pass over a (tm, D) row block."""
    x = x_ref[...]                                         # (tm, D) f32, read once
    h = jnp.dot(
        x.astype(jnp.bfloat16),                            # bf16 MXU operand
        w_ref[...],                                        # bf16 weight, resident
        preferred_element_type=jnp.float32,                # f32 accumulation
    )
    h = jnp.maximum(h + b_ref[...], 0.0)                   # bias + ReLU in f32
    scale = scale_ref[0]                                   # scalar from SMEM
    o_ref[...] = (x + scale * h).astype(o_ref.dtype)       # residual in f32, cast at store


def mlp_adapter(x, w, bias, scale, *, tm=256):
    """x: [B, S, D]; w: torch-layout [D_out, D_in] (D_out == D_in == D);
    bias: [D]; scale: [1]. Returns [B, S, D] (same semantics as the PyTorch module
    in eval mode)."""
    B, S, D = x.shape
    M = B * S
    tm = min(tm, M)
    assert M % tm == 0, f"B*S={M} must be divisible by row tile tm={tm}"
    assert D % 128 == 0, f"d_model={D} must be a multiple of 128 (lane width)"

    x2d = x.reshape(M, D)
    w_t = w.T.astype(jnp.bfloat16)      # [D_in, D_out] so kernel computes x @ W.T
    bias2d = bias.reshape(1, D).astype(jnp.float32)
    scale = scale.astype(jnp.float32)

    grid = (M // tm,)

    out2d = pl.pallas_call(
        adapter_kernel,
        out_shape=jax.ShapeDtypeStruct((M, D), x.dtype),
        grid_spec=pltpu.PrefetchScalarGridSpec(
            num_scalar_prefetch=0,
            grid=grid,
            in_specs=[
                # x row block: used for BOTH the matmul (full-K operand) and the residual.
                pl.BlockSpec((tm, D), lambda i: (i, 0)),
                # full weight, resident across the whole grid (constant index map).
                pl.BlockSpec((D, D), lambda i: (0, 0)),
                # bias row, broadcast over rows.
                pl.BlockSpec((1, D), lambda i: (0, 0)),
                # scale scalar in SMEM (untiled).
                pl.BlockSpec(memory_space=pltpu.MemorySpace.SMEM),
            ],
            out_specs=pl.BlockSpec((tm, D), lambda i: (i, 0)),
        ),
        compiler_params=pltpu.CompilerParams(
            dimension_semantics=("parallel",),
        ),
    )(x2d, w_t, bias2d, scale)

    return out2d.reshape(B, S, D)


if __name__ == "__main__":
    # Small shapes consistent with the module (d_model plays the role of 768 default).
    B, S, D = 2, 64, 256
    key = jax.random.PRNGKey(0)
    kx, kw, kb = jax.random.split(key, 3)

    x = jax.random.normal(kx, (B, S, D), dtype=jnp.float32)

    # Deterministic nn.Linear(d_model, d_model)-style init + scale = 1.
    bound = 1.0 / (D ** 0.5)
    w = jax.random.uniform(kw, (D, D), minval=-bound, maxval=bound,
                           dtype=jnp.float32)          # torch layout [out, in]
    bias = jax.random.uniform(kb, (D,), minval=-bound, maxval=bound,
                              dtype=jnp.float32)
    scale = jnp.ones((1,), dtype=jnp.float32)

    out = mlp_adapter(x, w, bias, scale)
    out = jax.block_until_ready(out)
    assert out.shape == (B, S, D)

    # Reference matching the kernel's numerics: bf16 MXU operands, f32 accumulation,
    # f32 residual/bias/ReLU/scale (dropout = identity in eval mode).
    x2d = x.reshape(B * S, D)
    xb = x2d.astype(jnp.bfloat16).astype(jnp.float32)
    wb = w.T.astype(jnp.bfloat16).astype(jnp.float32)
    ref = (x2d + scale[0] * jnp.maximum(xb @ wb + bias, 0.0)).reshape(B, S, D)
    assert jnp.allclose(out, ref, atol=1e-3, rtol=1e-3), "mismatch vs reference"

    # Loose sanity check against the pure-f32 PyTorch-equivalent reference.
    ref_f32 = x + scale[0] * jnp.maximum(
        jnp.einsum("bsd,de->bse", x, w.T) + bias, 0.0)
    assert jnp.allclose(out, ref_f32, atol=5e-2, rtol=5e-2), "mismatch vs f32 reference"

    print("KERNEL_OK")
</pallas_src>

<mosaic_0001>
module attributes {stable_mosaic.version = 11 : i64} {
  func.func @adapter_kernel(%arg0: i32, %arg1: memref<128x256xf32, #tpu.memory_space<vmem>>, %arg2: memref<256x256xbf16, #tpu.memory_space<vmem>>, %arg3: memref<1x256xf32, #tpu.memory_space<vmem>>, %arg4: memref<1xf32, #tpu.memory_space<smem>>, %arg5: memref<128x256xf32, #tpu.memory_space<vmem>>) attributes {dimension_semantics = [#tpu.dimension_semantics<parallel>], iteration_bounds = array<i64: 1>, scalar_prefetch = 0 : i64, scratch_operands = 0 : i64, tpu.core_type = #tpu.core_type<tc>, window_params = [{transform_indices = @transform_0, window_bounds = array<i64: 128, 256>}, {pipeline_mode = #tpu.pipeline_mode<synchronous>, transform_indices = @transform_1, window_bounds = array<i64: 256, 256>}, {pipeline_mode = #tpu.pipeline_mode<synchronous>, transform_indices = @transform_2, window_bounds = array<i64: 1, 256>}, {transform_indices = @transform_3, window_bounds = array<i64: 1>}, {transform_indices = @transform_4, window_bounds = array<i64: 128, 256>}]} {
    %c0 = arith.constant 0 : index
    %c0_0 = arith.constant 0 : index
    %0 = vector.load %arg1[%c0, %c0_0] : memref<128x256xf32, #tpu.memory_space<vmem>>, vector<128x256xf32>
    %1 = arith.truncf %0 : vector<128x256xf32> to vector<128x256xbf16>
    %c0_1 = arith.constant 0 : index
    %c0_2 = arith.constant 0 : index
    %2 = vector.load %arg2[%c0_1, %c0_2] : memref<256x256xbf16, #tpu.memory_space<vmem>>, vector<256x256xbf16>
    %cst = arith.constant dense<0.000000e+00> : vector<128x256xf32>
    %3 = tpu.matmul %1, %2, %cst {dimension_numbers = #tpu.dot_dimension_numbers<[1], [0], [0], [1], [0, 0, 1, 1], [], []>} : vector<128x256xbf16>, vector<256x256xbf16>, vector<128x256xf32> -> vector<128x256xf32>
    %c0_3 = arith.constant 0 : index
    %c0_4 = arith.constant 0 : index
    %4 = vector.load %arg3[%c0_3, %c0_4] : memref<1x256xf32, #tpu.memory_space<vmem>>, vector<1x256xf32>
    %5 = vector.broadcast %4 : vector<1x256xf32> to vector<128x256xf32>
    %6 = arith.addf %3, %5 : vector<128x256xf32>
    %cst_5 = arith.constant 0.000000e+00 : f32
    %7 = vector.broadcast %cst_5 : f32 to vector<128x256xf32>
    %8 = arith.maximumf %6, %7 : vector<128x256xf32>
    %c0_6 = arith.constant 0 : index
    %9 = memref.load %arg4[%c0_6] : memref<1xf32, #tpu.memory_space<smem>>
    %10 = vector.broadcast %9 : f32 to vector<128x256xf32>
    %11 = arith.mulf %10, %8 : vector<128x256xf32>
    %12 = arith.addf %0, %11 : vector<128x256xf32>
    %c0_7 = arith.constant 0 : index
    %c0_8 = arith.constant 0 : index
    %13 = vector.load %arg5[%c0_7, %c0_8] : memref<128x256xf32, #tpu.memory_space<vmem>>, vector<128x256xf32>
    tpu.vector_store %arg5[%c0_7, %c0_8], %12 {strides = array<i32>} : memref<128x256xf32, #tpu.memory_space<vmem>>, vector<128x256xf32>,
    return
  }
  func.func @transform_0(%arg0: i32) -> (i32, i32) {
    %c0_i32 = arith.constant 0 : i32
    %c0_i32_0 = arith.constant 0 : i32
    return %arg0, %c0_i32 : i32, i32
  }
  func.func @transform_1(%arg0: i32) -> (i32, i32) {
    %c0_i32 = arith.constant 0 : i32
    %c0_i32_0 = arith.constant 0 : i32
    %c0_i32_1 = arith.constant 0 : i32
    return %c0_i32, %c0_i32_0 : i32, i32
  }
  func.func @transform_2(%arg0: i32) -> (i32, i32) {
    %c0_i32 = arith.constant 0 : i32
    %c0_i32_0 = arith.constant 0 : i32
    %c0_i32_1 = arith.constant 0 : i32
    return %c0_i32, %c0_i32_0 : i32, i32
  }
  func.func @transform_3(%arg0: i32) -> i32 {
    %c0_i32 = arith.constant 0 : i32
    %c0_i32_0 = arith.constant 0 : i32
    return %c0_i32 : i32
  }
  func.func @transform_4(%arg0: i32) -> (i32, i32) {
    %c0_i32 = arith.constant 0 : i32
    %c0_i32_0 = arith.constant 0 : i32
    return %arg0, %c0_i32 : i32, i32
  }
}

</mosaic_0001>

<bundles_post_ra>
// kernel: tpu_custom_call.1
= control target key start
LH: loop header
LB: loop body
LE: loop exit
PB: predicated region body
PF: predicated region fallthrough
CT: control target
= control target key end

     0   :  { %10 = vsyncpa [#allocation4], 0  ;;  %s1029_s0 = inlined_call_operand.hbm [shape: f32[128,256], index: 0, kind: input, shape index: {}]   ;;  %s1030_s1 = inlined_call_operand.hbm [shape: bf16[256,256], index: 1, kind: input, shape index: {}]   ;;  %s1031_s2 = inlined_call_operand.vmem [shape: f32[1,256], index: 2, kind: input, shape index: {}]   ;;  %s1032_s3 = inlined_call_operand.<no memory space> [shape: f32[1], index: 3, kind: input, shape index: {}]   ;;  %s1033_s4 = inlined_call_operand.hbm [shape: f32[128,256], index: 4, kind: output, shape index: {}]  }
   0x1   :  { %11 = vsyncpa [#allocation7], 0 }
   0x2   :  { %12 = vsyncpa [#allocation5], 0  ;;  %s751_s15 = smov [#allocation3]   ;;  %s679_s19 = scalar_lea.hbm %s1029_s0, 4096 }
   0x3   :  { %s18_s16 = sshll.u32 %s751_s15, 4  ;;  %p680_p0 = scmp.ne.s32.totalorder %s1029_s0, %s679_s19  ;;  %s19_s16 = int_to_ptr.vmem [resolvable:$true] %s18_s16 }
   0x4   :  { %p683_p1 = scmp.lt.u32.totalorder %s679_s19, %s1029_s0 }
   0x6   :  { %p685_p2 = pnand %p683_p1, %p680_p0 }
   0x8   :  { %688 = shalt.err (!%p685_p2)
}
   0x9   :  { %s689_s24 = scalar_lea.vmem %s19_s16, 4096  ;;  %p694_p4 = scmp.lt.s32.totalorder %s19_s16, %s19_s16 }
   0xa   :  { %p690_p3 = scmp.ne.s32.totalorder %s19_s16, %s689_s24  ;;  %p695_p5 = scmp.lt.s32.totalorder %s689_s24, %s689_s24 }
   0xc   :  { %p696_p6 = por %p695_p5, %p694_p4 }
   0xe   :  { %p697_p7 = pnand %p696_p6, %p690_p3 }
  0x10   :  { %700 = shalt.err (!%p697_p7)
}
  0x11   :  { %s752_s25 = smov 256   ;;  %s753_s26 = smov 16  }
  0x12   :  { %24 = dma.hbm_to_vmem [thread:$0]  %s1029_s0, 4096, %s19_s16, [#allocation4], %s752_s25, %s752_s25, %s753_s26  }
  0x13   :  { %s754_s29 = smov [#allocation6]   ;;  %s701_s7 = scalar_lea.hbm %s1030_s1, 4096 }
  0x14   :  { %s30_s30 = sshll.u32 %s754_s29, 4  ;;  %p702_p8 = scmp.ne.s32.totalorder %s1030_s1, %s701_s7  ;;  %s31_s30 = int_to_ptr.vmem [resolvable:$true] %s30_s30 }
  0x15   :  { %p705_p9 = scmp.lt.u32.totalorder %s701_s7, %s1030_s1 }
  0x17   :  { %p707_p10 = pnand %p705_p9, %p702_p8 }
  0x19   :  { %710 = shalt.err (!%p707_p10)
}
  0x1a   :  { %s711_s12 = scalar_lea.vmem %s31_s30, 4096  ;;  %p716_p12 = scmp.lt.s32.totalorder %s31_s30, %s31_s30 }
  0x1b   :  { %p712_p11 = scmp.ne.s32.totalorder %s31_s30, %s711_s12  ;;  %p717_p13 = scmp.lt.s32.totalorder %s711_s12, %s711_s12 }
  0x1d   :  { %p718_p0 = por %p717_p13, %p716_p12 }
  0x1f   :  { %p719_p1 = pnand %p718_p0, %p712_p11 }
  0x21   :  { %722 = shalt.err (!%p719_p1)
}
  0x22   :  { %s755_s0 = smov 128   ;;  %s756_s13 = smov 8  }
  0x23   :  { %36 = dma.hbm_to_vmem [thread:$0]  %s1030_s1, 4096, %s31_s30, [#allocation7], %s755_s0, %s755_s0, %s756_s13  }
  0x24   :  { %745 = dma.done.wait [#allocation4], 4096  }
  0x25   :  { %746 = vsyncadd [#allocation4], 4294963200 }
  0x26   :  { %747 = dma.done.wait [#allocation7], 4096  }
  0x27   :  { %748 = vsyncadd [#allocation7], 4294963200  ;;  %v631_v0 = vld [vmem:[#allocation6 + $0x4] ss:$8 sps:$4 sm:$0xff]   ;;  %v633_v1 = vld [vmem:[#allocation6] ss:$8 sps:$4 sm:$0xff]  }
  0x28   :  { %299 = vmatprep.subr.bf16.mxu0 %v631_v0  ;;  %592 = vmatprep.subr.bf16.mxu1 %v631_v0  ;;  %v634_v2 = vld [vmem:[#allocation6 + $0x14] ss:$8 sps:$4 sm:$0xff]   ;;  %v636_v3 = vld [vmem:[#allocation6 + $0x10] ss:$8 sps:$4 sm:$0xff]   ;;  %v637_v4 = vld [vmem:[#allocation6 + $0x24] ss:$8 sps:$4 sm:$0xff]  }
  0x29   :  { %300 = vmatpush1.bf16.msra.mxu0 %v633_v1  ;;  %608 = vmatpush1.bf16.msra.mxu1 %v633_v1  ;;  %v639_v5 = vld [vmem:[#allocation6 + $0x20] ss:$8 sps:$4 sm:$0xff]   ;;  %v640_v6 = vld [vmem:[#allocation6 + $0x34] ss:$8 sps:$4 sm:$0xff]   ;;  %v642_v7 = vld [vmem:[#allocation6 + $0x30] ss:$8 sps:$4 sm:$0xff]  }
  0x2a   :  { %301 = vmatprep.subr.bf16.mxu0 %v634_v2  ;;  %593 = vmatprep.subr.bf16.mxu1 %v634_v2  ;;  %v643_v8 = vld [vmem:[#allocation6 + $0x44] ss:$8 sps:$4 sm:$0xff]   ;;  %v645_v9 = vld [vmem:[#allocation6 + $0x40] ss:$8 sps:$4 sm:$0xff]   ;;  %v646_v10 = vld [vmem:[#allocation6 + $0x54] ss:$8 sps:$4 sm:$0xff]  }
  0x2b   :  { %v648_v11 = vld [vmem:[#allocation6 + $0x50] ss:$8 sps:$4 sm:$0xff]   ;;  %v649_v12 = vld [vmem:[#allocation6 + $0x64] ss:$8 sps:$4 sm:$0xff]   ;;  %v651_v18 = vld [vmem:[#allocation6 + $0x60] ss:$8 sps:$4 sm:$0xff]  }
  0x2c   :  { %v810_v13 = vld [vmem:[#allocation3 + $0x8] sm:$0xff]  ;;  %v812_v14 = vld [vmem:[#allocation3 + $0x18] sm:$0xff]  ;;  %v822_v38 = vld [vmem:[#allocation3] sm:$0xff] }
  0x2d   :  { %302 = vmatpush1.bf16.msra.mxu0 %v636_v3  ;;  %609 = vmatpush1.bf16.msra.mxu1 %v636_v3  ;;  %v80_v15 = vpack.c.bf16 %v812_v14, %v810_v13  ;;  %v816_v16 = vld [vmem:[#allocation3 + $0x88] sm:$0xff]  ;;  %v818_v17 = vld [vmem:[#allocation3 + $0x98] sm:$0xff]  ;;  %v824_v39 = vld [vmem:[#allocation3 + $0x10] sm:$0xff] }
  0x2e   :  { %303 = vmatprep.subr.bf16.mxu0 %v637_v4  ;;  %594 = vmatprep.subr.bf16.mxu1 %v637_v4  ;;  %v88_v19 = vpack.c.bf16 %v818_v17, %v816_v16  ;;  %v652_v20 = vld [vmem:[#allocation6 + $0x74] ss:$8 sps:$4 sm:$0xff]   ;;  %v654_v21 = vld [vmem:[#allocation6 + $0x70] ss:$8 sps:$4 sm:$0xff]   ;;  %v655_v22 = vld [vmem:[#allocation6 + $0x84] ss:$8 sps:$4 sm:$0xff]   ;;  %v79_v46 = vpack.c.bf16 %v824_v39, %v822_v38 }
  0x2f   :  { %331 = vmatprep.mubr.bf16.mxu0 %v80_v15  ;;  %v657_v23 = vld [vmem:[#allocation6 + $0x80] ss:$8 sps:$4 sm:$0xff]   ;;  %v658_v24 = vld [vmem:[#allocation6 + $0x94] ss:$8 sps:$4 sm:$0xff]   ;;  %v660_v25 = vld [vmem:[#allocation6 + $0x90] ss:$8 sps:$4 sm:$0xff]  }
  0x30   :  { %371 = vmatprep.mubr.bf16.mxu1 %v88_v19  ;;  %v661_v26 = vld [vmem:[#allocation6 + $0xa4] ss:$8 sps:$4 sm:$0xff]   ;;  %v663_v27 = vld [vmem:[#allocation6 + $0xa0] ss:$8 sps:$4 sm:$0xff]   ;;  %v664_v28 = vld [vmem:[#allocation6 + $0xb4] ss:$8 sps:$4 sm:$0xff]  }
  0x31   :  { %304 = vmatpush1.bf16.msra.mxu0 %v639_v5  ;;  %610 = vmatpush1.bf16.msra.mxu1 %v639_v5  ;;  %v666_v29 = vld [vmem:[#allocation6 + $0xb0] ss:$8 sps:$4 sm:$0xff]   ;;  %v667_v30 = vld [vmem:[#allocation6 + $0xc4] ss:$8 sps:$4 sm:$0xff]   ;;  %v669_v31 = vld [vmem:[#allocation6 + $0xc0] ss:$8 sps:$4 sm:$0xff]  }
  0x32   :  { %305 = vmatprep.subr.bf16.mxu0 %v640_v6  ;;  %595 = vmatprep.subr.bf16.mxu1 %v640_v6  ;;  %v670_v32 = vld [vmem:[#allocation6 + $0xd4] ss:$8 sps:$4 sm:$0xff]   ;;  %v672_v33 = vld [vmem:[#allocation6 + $0xd0] ss:$8 sps:$4 sm:$0xff]   ;;  %v673_v34 = vld [vmem:[#allocation6 + $0xe4] ss:$8 sps:$4 sm:$0xff]  }
  0x33   :  { %v675_v35 = vld [vmem:[#allocation6 + $0xe0] ss:$8 sps:$4 sm:$0xff]   ;;  %v676_v36 = vld [vmem:[#allocation6 + $0xf4] ss:$8 sps:$4 sm:$0xff]   ;;  %v678_v37 = vld [vmem:[#allocation6 + $0xf0] ss:$8 sps:$4 sm:$0xff]  }
  0x34   :  { %v826_v40 = vld [vmem:[#allocation3 + $0x80] sm:$0xff]  ;;  %v828_v41 = vld [vmem:[#allocation3 + $0x90] sm:$0xff]  ;;  %v830_v42 = vld [vmem:[#allocation3 + $0x28] sm:$0xff] }
  0x35   :  { %306 = vmatpush1.bf16.msra.mxu0 %v642_v7  ;;  %611 = vmatpush1.bf16.msra.mxu1 %v642_v7  ;;  %v832_v43 = vld [vmem:[#allocation3 + $0x38] sm:$0xff]  ;;  %v834_v44 = vld [vmem:[#allocation3 + $0xa8] sm:$0xff]  ;;  %v87_v47 = vpack.c.bf16 %v828_v41, %v826_v40  ;;  %v846_v50 = vld [vmem:[#allocation3 + $0x20] sm:$0xff] }
  0x36   :  { %307 = vmatprep.subr.bf16.mxu0 %v643_v8  ;;  %596 = vmatprep.subr.bf16.mxu1 %v643_v8  ;;  %v836_v45 = vld [vmem:[#allocation3 + $0xb8] sm:$0xff]  ;;  %v82_v48 = vpack.c.bf16 %v832_v43, %v830_v42  ;;  %v848_v51 = vld [vmem:[#allocation3 + $0x30] sm:$0xff]  ;;  %v850_v52 = vld [vmem:[#allocation3 + $0xa0] sm:$0xff] }
  0x37   :  { %v90_v49 = vpack.c.bf16 %v836_v45, %v834_v44  ;;  %v852_v53 = vld [vmem:[#allocation3 + $0xb0] sm:$0xff]  ;;  %v854_v54 = vld [vmem:[#allocation3 + $0x48] sm:$0xff]  ;;  %v856_v55 = vld [vmem:[#allocation3 + $0x58] sm:$0xff]  ;;  %v81_v58 = vpack.c.bf16 %v848_v51, %v846_v50 }
  0x38   :  { %v858_v56 = vld [vmem:[#allocation3 + $0xc8] sm:$0xff]  ;;  %v860_v57 = vld [vmem:[#allocation3 + $0xd8] sm:$0xff]  ;;  %v89_v59 = vpack.c.bf16 %v852_v53, %v850_v52  ;;  %v84_v60 = vpack.c.bf16 %v856_v55, %v854_v54  ;;  %v870_v62 = vld [vmem:[#allocation3 + $0x40] sm:$0xff] }
  0x39   :  { %308 = vmatpush1.bf16.msra.mxu0 %v645_v9  ;;  %612 = vmatpush1.bf16.msra.mxu1 %v645_v9  ;;  %v92_v61 = vpack.c.bf16 %v860_v57, %v858_v56  ;;  %v872_v63 = vld [vmem:[#allocation3 + $0x50] sm:$0xff]  ;;  %v874_v0 = vld [vmem:[#allocation3 + $0xc0] sm:$0xff]  ;;  %v878_v2 = vld [vmem:[#allocation3 + $0x68] sm:$0xff] }
  0x3a   :  { %309 = vmatprep.subr.bf16.mxu0 %v646_v10  ;;  %597 = vmatprep.subr.bf16.mxu1 %v646_v10  ;;  %v876_v1 = vld [vmem:[#allocation3 + $0xd0] sm:$0xff]  ;;  %v880_v3 = vld [vmem:[#allocation3 + $0x78] sm:$0xff]  ;;  %v882_v4 = vld [vmem:[#allocation3 + $0xe8] sm:$0xff]  ;;  %v83_v6 = vpack.c.bf16 %v872_v63, %v870_v62 }
  0x3b   :  { %v884_v5 = vld [vmem:[#allocation3 + $0xf8] sm:$0xff]  ;;  %v91_v7 = vpack.c.bf16 %v876_v1, %v874_v0  ;;  %v86_v8 = vpack.c.bf16 %v880_v3, %v878_v2  ;;  %v894_v10 = vld [vmem:[#allocation3 + $0x60] sm:$0xff]  ;;  %v900_v15 = vld [vmem:[#allocation3 + $0xf0] sm:$0xff] }
  0x3c   :  { %v94_v9 = vpack.c.bf16 %v884_v5, %v882_v4 }
  0x3d   :  { %310 = vmatpush1.bf16.msra.mxu0 %v648_v11  ;;  %613 = vmatpush1.bf16.msra.mxu1 %v648_v11  ;;  %v896_v11 = vld [vmem:[#allocation3 + $0x70] sm:$0xff] }
  0x3e   :  { %311 = vmatprep.subr.bf16.mxu0 %v649_v12  ;;  %598 = vmatprep.subr.bf16.mxu1 %v649_v12  ;;  %v898_v12 = vld [vmem:[#allocation3 + $0xe0] sm:$0xff] }
  0x3f   :  { %v93_v19 = vpack.c.bf16 %v900_v15, %v898_v12 }
  0x41   :  { %312 = vmatpush1.bf16.msra.mxu0 %v651_v18  ;;  %614 = vmatpush1.bf16.msra.mxu1 %v651_v18  ;;  %v85_v18 = vpack.c.bf16 %v896_v11, %v894_v10 }
  0x42   :  { %313 = vmatprep.subr.bf16.mxu0 %v652_v20  ;;  %599 = vmatprep.subr.bf16.mxu1 %v652_v20  ;;  %v129_v20 = vlaneseq }
  0x45   :  { %314 = vmatpush1.bf16.msra.mxu0 %v654_v21  ;;  %615 = vmatpush1.bf16.msra.mxu1 %v654_v21  ;;  %v130_v21 = vshrl.u32 %v129_v20, 7 }
  0x46   :  { %315 = vmatprep.subr.bf16.mxu0 %v655_v22  ;;  %600 = vmatprep.subr.bf16.mxu1 %v655_v22 }
  0x47   :  { %v131_v22 = vsub.s32 0, %v130_v21 }
  0x49   :  { %316 = vmatpush1.bf16.msra.mxu0 %v657_v23  ;;  %616 = vmatpush1.bf16.msra.mxu1 %v657_v23  ;;  %v127_v23 = vld [vmem:[%s1031_s2] sm:$0x3]  ;;  %s757_s2 = smov [#allocation8]  }
  0x4a   :  { %317 = vmatprep.subr.bf16.mxu0 %v658_v24  ;;  %601 = vmatprep.subr.bf16.mxu1 %v658_v24  ;;  %v135_v24 = vsub.s32 1, %v130_v21 }
  0x4d   :  { %318 = vmatpush1.bf16.msra.mxu0 %v660_v25  ;;  %617 = vmatpush1.bf16.msra.mxu1 %v660_v25  ;;  %v909_v25 = vrot.slane %v127_v23, %v131_v22 }
  0x4e   :  { %319 = vmatprep.subr.bf16.mxu0 %v661_v26  ;;  %602 = vmatprep.subr.bf16.mxu1 %v661_v26  ;;  %v911_v26 = vrot.slane %v127_v23, %v135_v24 }
  0x51   :  { %320 = vmatpush1.bf16.msra.mxu0 %v663_v27  ;;  %618 = vmatpush1.bf16.msra.mxu1 %v663_v27 }
  0x52   :  { %321 = vmatprep.subr.bf16.mxu0 %v664_v28  ;;  %603 = vmatprep.subr.bf16.mxu1 %v664_v28 }
  0x55   :  { %322 = vmatpush1.bf16.msra.mxu0 %v666_v29  ;;  %619 = vmatpush1.bf16.msra.mxu1 %v666_v29 }
  0x56   :  { %323 = vmatprep.subr.bf16.mxu0 %v667_v30  ;;  %604 = vmatprep.subr.bf16.mxu1 %v667_v30 }
  0x59   :  { %324 = vmatpush1.bf16.msra.mxu0 %v669_v31  ;;  %620 = vmatpush1.bf16.msra.mxu1 %v669_v31 }
  0x5a   :  { %325 = vmatprep.subr.bf16.mxu0 %v670_v32  ;;  %605 = vmatprep.subr.bf16.mxu1 %v670_v32 }
  0x5d   :  { %326 = vmatpush1.bf16.msra.mxu0 %v672_v33  ;;  %621 = vmatpush1.bf16.msra.mxu1 %v672_v33  ;;  %v918_v33 = vstv %s1032_s3  ;;  %s547_s3 = sshll.u32 %s757_s2, 4  ;;  %s548_s3 = int_to_ptr.vmem [resolvable:$true] %s547_s3 }
  0x5e   :  { %327 = vmatprep.subr.bf16.mxu0 %v673_v34  ;;  %606 = vmatprep.subr.bf16.mxu1 %v673_v34  ;;  %s723_s19 = scalar_lea.vmem %s548_s3, 4096  ;;  %p728_p3 = scmp.lt.s32.totalorder %s548_s3, %s548_s3 }
  0x5f   :  { %p724_p2 = scmp.ne.s32.totalorder %s548_s3, %s723_s19  ;;  %p729_p4 = scmp.lt.s32.totalorder %s723_s19, %s723_s19 }
  0x61   :  { %328 = vmatpush1.bf16.msra.mxu0 %v675_v35  ;;  %622 = vmatpush1.bf16.msra.mxu1 %v675_v35  ;;  %p730_p5 = por %p729_p4, %p728_p3 }
  0x62   :  { %329 = vmatprep.subr.bf16.mxu0 %v676_v36  ;;  %607 = vmatprep.subr.bf16.mxu1 %v676_v36 }
  0x63   :  { %p731_p6 = pnand %p730_p5, %p724_p2 }
  0x65   :  { %330 = vmatpush1.bf16.msra.mxu0 %v678_v37  ;;  %623 = vmatpush1.bf16.msra.mxu1 %v678_v37 }
  0x68   :  { %332 = vmatmul.mubr.bf16.vlgmr.msra.gmra.mrb[0].mxu0 %v79_v46  ;;  %372 = vmatmul.mubr.bf16.vlgmr.msra.gmra.mrb[0].mxu1 %v87_v47 }
  0x69   :  { %341 = vmatprep.mubr.bf16.mxu0 %v82_v48  ;;  %381 = vmatprep.mubr.bf16.mxu1 %v90_v49 }
  0x70   :  { %342 = vmatmul.mubr.bf16.gmra.mrb[4].mxu0 %v81_v58  ;;  %382 = vmatmul.mubr.bf16.gmra.mrb[4].mxu1 %v89_v59 }
  0x71   :  { %351 = vmatprep.mubr.bf16.mxu0 %v84_v60  ;;  %391 = vmatprep.mubr.bf16.mxu1 %v92_v61 }
  0x78   :  { %352 = vmatmul.mubr.bf16.gmra.mrb[8].mxu0 %v83_v6  ;;  %392 = vmatmul.mubr.bf16.gmra.mrb[8].mxu1 %v91_v7 }
  0x79   :  { %361 = vmatprep.mubr.bf16.mxu0 %v86_v8  ;;  %401 = vmatprep.mubr.bf16.mxu1 %v94_v9 }
  0x80   :  { %362 = vmatmul.mubr.bf16.gmra.mrb[12].mxu0 %v85_v18  ;;  %402 = vmatmul.mubr.bf16.gmra.mrb[12].mxu1 %v93_v19 }
 0x13b   :  { %v333_v27 = vpop.f32.mrb[0].mxu0  ;;  %v373_v28 = vpop.f32.mrb[0].mxu1 }
 0x13c   :  { %v334_v29 = vadd.f32 %v333_v27, %v909_v25  ;;  %v374_v30 = vadd.f32 %v373_v28, %v909_v25  ;;  %v335_v31 = vpop.f32.mrb[1].mxu0  ;;  %v375_v32 = vpop.f32.mrb[1].mxu1 }
 0x13d   :  { %v336_v34 = vadd.f32 %v335_v31, %v911_v26  ;;  %v376_v35 = vadd.f32 %v375_v32, %v911_v26  ;;  %v337_v36 = vpop.f32.mrb[2].mxu0  ;;  %v377_v37 = vpop.f32.mrb[2].mxu1 }
 0x13e   :  { %v412_v46 = vmax.f32 %v334_v29, 0.0  ;;  %v428_v47 = vmax.f32 %v374_v30, 0.0  ;;  %v338_v48 = vadd.f32 %v337_v36, %v909_v25  ;;  %v378_v49 = vadd.f32 %v377_v37, %v909_v25  ;;  %v339_v58 = vpop.f32.mrb[3].mxu0  ;;  %v379_v59 = vpop.f32.mrb[3].mxu1 }
 0x13f   :  { %v413_v60 = vmax.f32 %v336_v34, 0.0  ;;  %v429_v61 = vmax.f32 %v376_v35, 0.0  ;;  %v340_v6 = vadd.f32 %v339_v58, %v911_v26  ;;  %v380_v7 = vadd.f32 %v379_v59, %v911_v26 }
 0x140   :  { %v446_v8 = vmul.f32 %v918_v33, %v412_v46  ;;  %v462_v9 = vmul.f32 %v918_v33, %v428_v47  ;;  %v414_v18 = vmax.f32 %v338_v48, 0.0  ;;  %v430_v19 = vmax.f32 %v378_v49, 0.0 }
 0x141   :  { %v447_v20 = vmul.f32 %v918_v33, %v413_v60  ;;  %v463_v21 = vmul.f32 %v918_v33, %v429_v61  ;;  %v415_v22 = vmax.f32 %v340_v6, 0.0  ;;  %v431_v23 = vmax.f32 %v380_v7, 0.0 }
 0x142   :  { %v478_v24 = vadd.f32 %v446_v8, %v822_v38  ;;  %v494_v27 = vadd.f32 %v462_v9, %v826_v40  ;;  %v448_v28 = vmul.f32 %v918_v33, %v414_v18  ;;  %v464_v29 = vmul.f32 %v918_v33, %v430_v19 }
 0x143   :  { %v479_v30 = vadd.f32 %v447_v20, %v810_v13  ;;  %v495_v31 = vadd.f32 %v463_v21, %v816_v16  ;;  %v449_v32 = vmul.f32 %v918_v33, %v415_v22  ;;  %v465_v34 = vmul.f32 %v918_v33, %v431_v23  ;;  %v343_v35 = vpop.f32.mrb[4].mxu0  ;;  %v383_v36 = vpop.f32.mrb[4].mxu1 }
 0x144   :  { %510 = vst [vmem:[#allocation8] sm:$0xff] %v478_v24  ;;  %526 = vst [vmem:[#allocation8 + $0x80] sm:$0xff] %v494_v27  ;;  %v480_v38 = vadd.f32 %v448_v28, %v824_v39  ;;  %v496_v40 = vadd.f32 %v464_v29, %v828_v41  ;;  %v344_v37 = vadd.f32 %v343_v35, %v909_v25  ;;  %v345_v47 = vpop.f32.mrb[5].mxu0  ;;  %v385_v13 = vpop.f32.mrb[5].mxu1 }
 0x145   :  { %v384_v46 = vadd.f32 %v383_v36, %v909_v25  ;;  %511 = vst [vmem:[#allocation8 + $0x8] sm:$0xff] %v479_v30  ;;  %527 = vst [vmem:[#allocation8 + $0x88] sm:$0xff] %v495_v31  ;;  %v481_v16 = vadd.f32 %v449_v32, %v812_v14  ;;  %v497_v48 = vadd.f32 %v465_v34, %v818_v17  ;;  %v347_v59 = vpop.f32.mrb[6].mxu0  ;;  %v387_v39 = vpop.f32.mrb[6].mxu1 }
 0x146   :  { %v346_v49 = vadd.f32 %v345_v47, %v911_v26  ;;  %v386_v58 = vadd.f32 %v385_v13, %v911_v26  ;;  %512 = vst [vmem:[#allocation8 + $0x10] sm:$0xff] %v480_v38  ;;  %528 = vst [vmem:[#allocation8 + $0x90] sm:$0xff] %v496_v40  ;;  %v416_v41 = vmax.f32 %v344_v37, 0.0  ;;  %v348_v61 = vadd.f32 %v347_v59, %v909_v25  ;;  %v349_v7 = vpop.f32.mrb[7].mxu0  ;;  %v389_v8 = vpop.f32.mrb[7].mxu1 }
 0x147   :  { %v432_v60 = vmax.f32 %v384_v46, 0.0  ;;  %v388_v6 = vadd.f32 %v387_v39, %v909_v25  ;;  %513 = vst [vmem:[#allocation8 + $0x18] sm:$0xff] %v481_v16  ;;  %529 = vst [vmem:[#allocation8 + $0x98] sm:$0xff] %v497_v48  ;;  %v350_v9 = vadd.f32 %v349_v7, %v911_v26  ;;  %v390_v18 = vadd.f32 %v389_v8, %v911_v26 }
 0x148   :  { %v417_v14 = vmax.f32 %v346_v49, 0.0  ;;  %v433_v17 = vmax.f32 %v386_v58, 0.0  ;;  %v450_v19 = vmul.f32 %v918_v33, %v416_v41  ;;  %v418_v21 = vmax.f32 %v348_v61, 0.0 }
 0x149   :  { %v466_v20 = vmul.f32 %v918_v33, %v432_v60  ;;  %v434_v22 = vmax.f32 %v388_v6, 0.0  ;;  %v419_v27 = vmax.f32 %v350_v9, 0.0  ;;  %v435_v28 = vmax.f32 %v390_v18, 0.0 }
 0x14a   :  { %v451_v23 = vmul.f32 %v918_v33, %v417_v14  ;;  %v467_v24 = vmul.f32 %v918_v33, %v433_v17  ;;  %v482_v29 = vadd.f32 %v450_v19, %v846_v50  ;;  %v452_v31 = vmul.f32 %v918_v33, %v418_v21 }
 0x14b   :  { %v498_v30 = vadd.f32 %v466_v20, %v850_v52  ;;  %v468_v32 = vmul.f32 %v918_v33, %v434_v22  ;;  %v453_v36 = vmul.f32 %v918_v33, %v419_v27  ;;  %v469_v38 = vmul.f32 %v918_v33, %v435_v28  ;;  %v353_v40 = vpop.f32.mrb[8].mxu0  ;;  %v393_v37 = vpop.f32.mrb[8].mxu1 }
 0x14c   :  { %v483_v34 = vadd.f32 %v451_v23, %v830_v42  ;;  %v499_v35 = vadd.f32 %v467_v24, %v834_v44  ;;  %514 = vst [vmem:[#allocation8 + $0x20] sm:$0xff] %v482_v29  ;;  %v484_v50 = vadd.f32 %v452_v31, %v848_v51  ;;  %v354_v46 = vadd.f32 %v353_v40, %v909_v25  ;;  %v355_v13 = vpop.f32.mrb[9].mxu0  ;;  %v395_v42 = vpop.f32.mrb[9].mxu1 }
 0x14d   :  { %530 = vst [vmem:[#allocation8 + $0xa0] sm:$0xff] %v498_v30  ;;  %v500_v52 = vadd.f32 %v468_v32, %v852_v53  ;;  %v394_v47 = vadd.f32 %v393_v37, %v909_v25  ;;  %v485_v44 = vadd.f32 %v453_v36, %v832_v43  ;;  %v501_v16 = vadd.f32 %v469_v38, %v836_v45  ;;  %v357_v58 = vpop.f32.mrb[10].mxu0  ;;  %v397_v51 = vpop.f32.mrb[10].mxu1 }
 0x14e   :  { %515 = vst [vmem:[#allocation8 + $0x28] sm:$0xff] %v483_v34  ;;  %531 = vst [vmem:[#allocation8 + $0xa8] sm:$0xff] %v499_v35  ;;  %v356_v48 = vadd.f32 %v355_v13, %v911_v26  ;;  %v396_v49 = vadd.f32 %v395_v42, %v911_v26  ;;  %v420_v53 = vmax.f32 %v354_v46, 0.0  ;;  %v358_v39 = vadd.f32 %v357_v58, %v909_v25  ;;  %v359_v60 = vpop.f32.mrb[11].mxu0  ;;  %v399_v61 = vpop.f32.mrb[11].mxu1 }
 0x14f   :  { %516 = vst [vmem:[#allocation8 + $0x30] sm:$0xff] %v484_v50  ;;  %532 = vst [vmem:[#allocation8 + $0xb0] sm:$0xff] %v500_v52  ;;  %v436_v59 = vmax.f32 %v394_v47, 0.0  ;;  %v398_v41 = vadd.f32 %v397_v51, %v909_v25  ;;  %v360_v6 = vadd.f32 %v359_v60, %v911_v26  ;;  %v400_v7 = vadd.f32 %v399_v61, %v911_v26 }
 0x150   :  { %517 = vst [vmem:[#allocation8 + $0x38] sm:$0xff] %v485_v44  ;;  %533 = vst [vmem:[#allocation8 + $0xb8] sm:$0xff] %v501_v16  ;;  %v421_v43 = vmax.f32 %v356_v48, 0.0  ;;  %v437_v45 = vmax.f32 %v396_v49, 0.0  ;;  %v454_v8 = vmul.f32 %v918_v33, %v420_v53  ;;  %v422_v17 = vmax.f32 %v358_v39, 0.0 }
 0x151   :  { %v470_v14 = vmul.f32 %v918_v33, %v436_v59  ;;  %v438_v9 = vmax.f32 %v398_v41, 0.0  ;;  %v423_v20 = vmax.f32 %v360_v6, 0.0  ;;  %v439_v21 = vmax.f32 %v400_v7, 0.0 }
 0x152   :  { %v455_v18 = vmul.f32 %v918_v33, %v421_v43  ;;  %v471_v19 = vmul.f32 %v918_v33, %v437_v45  ;;  %v486_v22 = vadd.f32 %v454_v8, %v870_v62  ;;  %v456_v24 = vmul.f32 %v918_v33, %v422_v17 }
 0x153   :  { %v502_v23 = vadd.f32 %v470_v14, %v874_v0  ;;  %v472_v27 = vmul.f32 %v918_v33, %v438_v9  ;;  %v457_v30 = vmul.f32 %v918_v33, %v423_v20  ;;  %v473_v31 = vmul.f32 %v918_v33, %v439_v21  ;;  %v363_v32 = vpop.f32.mrb[12].mxu0  ;;  %v403_v34 = vpop.f32.mrb[12].mxu1 }
 0x154   :  { %v487_v28 = vadd.f32 %v455_v18, %v854_v54  ;;  %v503_v29 = vadd.f32 %v471_v19, %v858_v56  ;;  %518 = vst [vmem:[#allocation8 + $0x40] sm:$0xff] %v486_v22  ;;  %v488_v62 = vadd.f32 %v456_v24, %v872_v63  ;;  %v364_v35 = vadd.f32 %v363_v32, %v909_v25  ;;  %v365_v38 = vpop.f32.mrb[13].mxu0  ;;  %v405_v54 = vpop.f32.mrb[13].mxu1 }
 0x155   :  { %534 = vst [vmem:[#allocation8 + $0xc0] sm:$0xff] %v502_v23  ;;  %v504_v0 = vadd.f32 %v472_v27, %v876_v1  ;;  %v404_v36 = vadd.f32 %v403_v34, %v909_v25  ;;  %v489_v56 = vadd.f32 %v457_v30, %v856_v55  ;;  %v505_v40 = vadd.f32 %v473_v31, %v860_v57  ;;  %v367_v52 = vpop.f32.mrb[14].mxu0  ;;  %v407_v63 = vpop.f32.mrb[14].mxu1 }
 0x156   :  { %519 = vst [vmem:[#allocation8 + $0x48] sm:$0xff] %v487_v28  ;;  %535 = vst [vmem:[#allocation8 + $0xc8] sm:$0xff] %v503_v29  ;;  %v366_v37 = vadd.f32 %v365_v38, %v911_v26  ;;  %v406_v50 = vadd.f32 %v405_v54, %v911_v26  ;;  %v424_v1 = vmax.f32 %v364_v35, 0.0  ;;  %v368_v47 = vadd.f32 %v367_v52, %v909_v25  ;;  %v369_v42 = vpop.f32.mrb[15].mxu0  ;;  %v409_v44 = vpop.f32.mrb[15].mxu1 }
 0x157   :  { %520 = vst [vmem:[#allocation8 + $0x50] sm:$0xff] %v488_v62  ;;  %536 = vst [vmem:[#allocation8 + $0xd0] sm:$0xff] %v504_v0  ;;  %v440_v46 = vmax.f32 %v404_v36, 0.0  ;;  %v408_v13 = vadd.f32 %v407_v63, %v909_v25  ;;  %v370_v16 = vadd.f32 %v369_v42, %v911_v26  ;;  %v410_v48 = vadd.f32 %v409_v44, %v911_v26 }
 0x158   :  { %521 = vst [vmem:[#allocation8 + $0x58] sm:$0xff] %v489_v56  ;;  %537 = vst [vmem:[#allocation8 + $0xd8] sm:$0xff] %v505_v40  ;;  %v425_v55 = vmax.f32 %v366_v37, 0.0  ;;  %v441_v57 = vmax.f32 %v406_v50, 0.0  ;;  %v458_v49 = vmul.f32 %v918_v33, %v424_v1  ;;  %v426_v51 = vmax.f32 %v368_v47, 0.0 }
 0x159   :  { %v474_v58 = vmul.f32 %v918_v33, %v440_v46  ;;  %v442_v53 = vmax.f32 %v408_v13, 0.0  ;;  %v427_v39 = vmax.f32 %v370_v16, 0.0  ;;  %v443_v41 = vmax.f32 %v410_v48, 0.0 }
 0x15a   :  { %v459_v59 = vmul.f32 %v918_v33, %v425_v55  ;;  %v475_v25 = vmul.f32 %v918_v33, %v441_v57  ;;  %v490_v60 = vadd.f32 %v458_v49, %v894_v10  ;;  %v460_v43 = vmul.f32 %v918_v33, %v426_v51 }
 0x15b   :  { %v506_v61 = vadd.f32 %v474_v58, %v898_v12  ;;  %v476_v26 = vmul.f32 %v918_v33, %v442_v53  ;;  %v461_v7 = vmul.f32 %v918_v33, %v427_v39  ;;  %v477_v8 = vmul.f32 %v918_v33, %v443_v41 }
 0x15c   :  { %v491_v45 = vadd.f32 %v459_v59, %v878_v2  ;;  %v507_v6 = vadd.f32 %v475_v25, %v882_v4  ;;  %522 = vst [vmem:[#allocation8 + $0x60] sm:$0xff] %v490_v60  ;;  %v492_v10 = vadd.f32 %v460_v43, %v896_v11 }
 0x15d   :  { %538 = vst [vmem:[#allocation8 + $0xe0] sm:$0xff] %v506_v61  ;;  %v508_v12 = vadd.f32 %v476_v26, %v900_v15  ;;  %v493_v14 = vadd.f32 %v461_v7, %v880_v3  ;;  %v509_v17 = vadd.f32 %v477_v8, %v884_v5 }
 0x15e   :  { %523 = vst [vmem:[#allocation8 + $0x68] sm:$0xff] %v491_v45  ;;  %539 = vst [vmem:[#allocation8 + $0xe8] sm:$0xff] %v507_v6 }
 0x15f   :  { %524 = vst [vmem:[#allocation8 + $0x70] sm:$0xff] %v492_v10  ;;  %540 = vst [vmem:[#allocation8 + $0xf0] sm:$0xff] %v508_v12 }
 0x160   :  { %525 = vst [vmem:[#allocation8 + $0x78] sm:$0xff] %v493_v14  ;;  %541 = vst [vmem:[#allocation8 + $0xf8] sm:$0xff] %v509_v17 }
 0x161   :  { %734 = shalt.err (!%p731_p6)
}
 0x162   :  { %s735_s22 = scalar_lea.hbm %s1033_s4, 4096 }
 0x163   :  { %p736_p7 = scmp.ne.s32.totalorder %s1033_s4, %s735_s22  ;;  %p739_p8 = scmp.lt.u32.totalorder %s735_s22, %s1033_s4 }
 0x165   :  { %p741_p9 = pnand %p739_p8, %p736_p7 }
 0x167   :  { %744 = shalt.err (!%p741_p9)
}
 0x168   :  { %553 = dma.vmem_to_hbm [thread:$0]  %s548_s3, 4096, %s1033_s4, [#allocation5], %s752_s25, %s752_s25, %s753_s26  }
 0x169   :  { %749 = dma.done.wait [#allocation5], 4096  }
 0x16a   :  { %750 = vsyncadd [#allocation5], 4294963200 }
 0x16b   :  { %557 = vsyncpa [#allocation4], 1 }
 0x16c   :  { %558 = vsyncpa [#allocation7], 1 }
 0x16d   :  { %559 = vsyncpa [#allocation5], 1 }

</bundles_post_ra>
